<compile_context>
chip_gen: v6e
topology: v6e:2x2x1
jax: 0.10.0
libtpu: 0.0.40
codegen_flags: <defaults>
</compile_context>

<pallas_src>
import jax
import jax.numpy as jnp
from jax.experimental import pallas as pl
from jax.experimental.pallas import tpu as pltpu

_LANE = 128  # pad hidden dim to one full lane vreg


def mlp_kernel(x_ref, w1_ref, b1_ref, w2_ref, o_ref):
    # fc1: (tb, D) @ (D, Hp) on the MXU; f32 accumulation even for bf16 inputs.
    h = jnp.dot(x_ref[...], w1_ref[...], preferred_element_type=jnp.float32)
    h = jnp.maximum(h + b1_ref[...], 0.0)  # bias + ReLU in f32 on the VPU
    # fc2 (no bias): K=10, N=1 dot product -> VPU multiply + lane reduce; skips a
    # second MXU round-trip and rides otherwise-idle VALU/XLU slots.
    o_ref[...] = jnp.sum(h * w2_ref[...], axis=-1, keepdims=True).astype(o_ref.dtype)


def _pack_params(w1, b1, w2, compute_dtype):
    """Zero-pad the hidden dim to a full lane width; fc2 weight as a row."""
    d, h = w1.shape
    hp = max(_LANE, pl.cdiv(h, _LANE) * _LANE)
    w1p = jnp.zeros((d, hp), compute_dtype).at[:, :h].set(w1.astype(compute_dtype))
    b1p = jnp.zeros((1, hp), jnp.float32).at[:, :h].set(
        b1.reshape(1, h).astype(jnp.float32))
    w2p = jnp.zeros((1, hp), jnp.float32).at[:, :h].set(
        w2.reshape(1, h).astype(jnp.float32))
    return w1p, b1p, w2p, hp


def net_forward(x, w1, b1, w2, *, tile_b=512, use_bf16=False):
    """Pallas implementation of Net.forward.

    x:  (B, n_input) float32
    w1: (n_input, 10) float32   (transpose of torch fc1.weight)
    b1: (1, 10) float32
    w2: (10, 1) float32         (transpose of torch fc2.weight)
    returns: (B, 1) float32
    """
    B, D = x.shape
    compute_dtype = jnp.bfloat16 if use_bf16 else jnp.float32
    w1p, b1p, w2p, hp = _pack_params(w1, b1, w2, compute_dtype)
    xc = x.astype(compute_dtype)

    if B <= tile_b:
        # Small batch: single invocation, no grid -> no per-step pipeline
        # overhead.  All operands are tiny and live fully in VMEM.
        vmem = pl.BlockSpec(memory_space=pltpu.MemorySpace.VMEM)
        return pl.pallas_call(
            mlp_kernel,
            out_shape=jax.ShapeDtypeStruct((B, 1), jnp.float32),
            in_specs=[vmem, vmem, vmem, vmem],
            out_specs=vmem,
        )(xc, w1p, b1p, w2p)

    # Large batch: tile the batch axis.  Weight/bias blocks have a constant
    # block index so they stay resident in VMEM across the grid; the batch axis
    # is "parallel" so the grid can shard across TensorCores (v7x megacore).
    nb = pl.cdiv(B, tile_b)
    bp = nb * tile_b
    if bp != B:
        xc = jnp.zeros((bp, D), xc.dtype).at[:B].set(xc)

    out = pl.pallas_call(
        mlp_kernel,
        out_shape=jax.ShapeDtypeStruct((bp, 1), jnp.float32),
        grid=(nb,),
        in_specs=[
            pl.BlockSpec((tile_b, D), lambda i: (i, 0)),
            pl.BlockSpec((D, hp), lambda i: (0, 0)),
            pl.BlockSpec((1, hp), lambda i: (0, 0)),
            pl.BlockSpec((1, hp), lambda i: (0, 0)),
        ],
        # TODO(synk): for very large B, a lane-dense (1, tile_b) output layout
        # (batch on the lane axis) would avoid masked stores on the (tile_b, 1)
        # writeback; at 4 B/row vs 128 B/row of input traffic it is a minor term.
        out_specs=pl.BlockSpec((tile_b, 1), lambda i: (i, 0)),
        compiler_params=pltpu.CompilerParams(
            dimension_semantics=("parallel",),
        ),
    )(xc, w1p, b1p, w2p)
    return out[:B]


if __name__ == "__main__":
    n_input, hidden = 32, 10
    key = jax.random.PRNGKey(0)
    kx, kw1, kb1, kw2, kxl = jax.random.split(key, 5)

    # Deterministic params (same shapes as torch: fc1 (10, n_input), fc2 (1, 10)),
    # stored pre-transposed for the kernel.
    bound1 = 1.0 / jnp.sqrt(n_input)
    w1 = jax.random.uniform(kw1, (n_input, hidden), dtype=jnp.float32,
                            minval=-bound1, maxval=bound1)
    b1 = jax.random.uniform(kb1, (1, hidden), dtype=jnp.float32,
                            minval=-bound1, maxval=bound1)
    bound2 = 1.0 / jnp.sqrt(hidden)
    w2 = jax.random.uniform(kw2, (hidden, 1), dtype=jnp.float32,
                            minval=-bound2, maxval=bound2)

    def ref_fn(x):
        return jnp.maximum(x @ w1 + b1, 0.0) @ w2

    # Small batch -> no-grid path.
    x_small = jax.random.normal(kx, (8, n_input), dtype=jnp.float32)
    out_small = net_forward(x_small, w1, b1, w2)
    jax.block_until_ready(out_small)
    assert out_small.shape == (8, 1)
    assert jnp.allclose(out_small, ref_fn(x_small), atol=1e-5, rtol=1e-5)

    # Larger batch (not a tile multiple) -> batch-tiled grid path, f32.
    x_large = jax.random.normal(kxl, (1000, n_input), dtype=jnp.float32)
    out_large = net_forward(x_large, w1, b1, w2)
    jax.block_until_ready(out_large)
    assert out_large.shape == (1000, 1)
    assert jnp.allclose(out_large, ref_fn(x_large), atol=1e-5, rtol=1e-5)

    # bf16 activation/weight stream (halves HBM bytes that scale with B);
    # f32 accumulation in-kernel, so only input-rounding error remains.
    out_bf16 = net_forward(x_large, w1, b1, w2, use_bf16=True)
    jax.block_until_ready(out_bf16)
    assert jnp.allclose(out_bf16, ref_fn(x_large), atol=5e-2, rtol=5e-2)

    print("KERNEL_OK")
</pallas_src>

<mosaic_0001>
module attributes {stable_mosaic.version = 11 : i64} {
  func.func @mlp_kernel(%arg0: memref<8x32xf32, #tpu.memory_space<vmem>>, %arg1: memref<32x128xf32, #tpu.memory_space<vmem>>, %arg2: memref<1x128xf32, #tpu.memory_space<vmem>>, %arg3: memref<1x128xf32, #tpu.memory_space<vmem>>, %arg4: memref<8x1xf32, #tpu.memory_space<vmem>>) attributes {dimension_semantics = [], scalar_prefetch = 0 : i64, scratch_operands = 0 : i64, tpu.core_type = #tpu.core_type<tc>} {
    %c0 = arith.constant 0 : index
    %c0_0 = arith.constant 0 : index
    %0 = vector.load %arg0[%c0, %c0_0] : memref<8x32xf32, #tpu.memory_space<vmem>>, vector<8x32xf32>
    %c0_1 = arith.constant 0 : index
    %c0_2 = arith.constant 0 : index
    %1 = vector.load %arg1[%c0_1, %c0_2] : memref<32x128xf32, #tpu.memory_space<vmem>>, vector<32x128xf32>
    %cst = arith.constant dense<0.000000e+00> : vector<8x128xf32>
    %2 = tpu.matmul %0, %1, %cst {dimension_numbers = #tpu.dot_dimension_numbers<[1], [0], [0], [1], [0, 0, 1, 1], [], []>} : vector<8x32xf32>, vector<32x128xf32>, vector<8x128xf32> -> vector<8x128xf32>
    %c0_3 = arith.constant 0 : index
    %c0_4 = arith.constant 0 : index
    %3 = vector.load %arg2[%c0_3, %c0_4] : memref<1x128xf32, #tpu.memory_space<vmem>>, vector<1x128xf32>
    %4 = vector.broadcast %3 : vector<1x128xf32> to vector<8x128xf32>
    %5 = arith.addf %2, %4 : vector<8x128xf32>
    %cst_5 = arith.constant 0.000000e+00 : f32
    %6 = vector.broadcast %cst_5 : f32 to vector<8x128xf32>
    %7 = arith.maximumf %5, %6 : vector<8x128xf32>
    %c0_6 = arith.constant 0 : index
    %c0_7 = arith.constant 0 : index
    %8 = vector.load %arg3[%c0_6, %c0_7] : memref<1x128xf32, #tpu.memory_space<vmem>>, vector<1x128xf32>
    %9 = vector.broadcast %8 : vector<1x128xf32> to vector<8x128xf32>
    %10 = arith.mulf %7, %9 : vector<8x128xf32>
    %cst_8 = arith.constant dense<0.000000e+00> : vector<8xf32>
    %11 = vector.multi_reduction <add>, %10, %cst_8 [1] : vector<8x128xf32> to vector<8xf32>
    %12 = vector.shape_cast %11 : vector<8xf32> to vector<8x1xf32>
    %c0_9 = arith.constant 0 : index
    %c0_10 = arith.constant 0 : index
    %13 = vector.load %arg4[%c0_9, %c0_10] : memref<8x1xf32, #tpu.memory_space<vmem>>, vector<8x1xf32>
    tpu.vector_store %arg4[%c0_9, %c0_10], %12 {strides = array<i32>} : memref<8x1xf32, #tpu.memory_space<vmem>>, vector<8x1xf32>,
    return
  }
}

</mosaic_0001>

<bundles_post_ra>
// kernel: tpu_custom_call.1
= control target key start
LH: loop header
LB: loop body
LE: loop exit
PB: predicated region body
PF: predicated region fallthrough
CT: control target
= control target key end

     0   :  { %9 = vsyncpa [#allocation3], 0  ;;  %s263_s0 = inlined_call_operand.hbm [shape: f32[8,32], index: 0, kind: input, shape index: {}]   ;;  %s264_s1 = inlined_call_operand.hbm [shape: f32[32,128], index: 1, kind: input, shape index: {}]   ;;  %s265_s2 = inlined_call_operand.vmem [shape: f32[1,128], index: 2, kind: input, shape index: {}]   ;;  %s266_s3 = inlined_call_operand.vmem [shape: f32[1,128], index: 3, kind: input, shape index: {}]   ;;  %s267_s4 = inlined_call_operand.vmem [shape: f32[8,1], index: 4, kind: output, shape index: {}]  }
   0x1   :  { %10 = vsyncpa [#allocation5], 0  ;;  %s217_s15 = smov [#allocation2]   ;;  %s218_s17 = smov [#allocation4]  }
   0x2   :  { %s17_s16 = sshll.u32 %s217_s15, 4  ;;  %s26_s18 = sshll.u32 %s218_s17, 4  ;;  %s18_s16 = int_to_ptr.vmem [resolvable:$true] %s17_s16  ;;  %s27_s18 = int_to_ptr.vmem [resolvable:$true] %s26_s18 }
   0x3   :  { %s181_s19 = scalar_lea.vmem %s18_s16, 128  ;;  %p186_p1 = scmp.lt.s32.totalorder %s18_s16, %s18_s16 }
   0x4   :  { %p182_p0 = scmp.ne.s32.totalorder %s18_s16, %s181_s19  ;;  %p187_p2 = scmp.lt.s32.totalorder %s181_s19, %s181_s19 }
   0x6   :  { %p188_p3 = por %p187_p2, %p186_p1 }
   0x8   :  { %p189_p4 = pnand %p188_p3, %p182_p0 }
   0xa   :  { %192 = shalt.err (!%p189_p4)
}
   0xb   :  { %20 = dma.hbm_to_vmem [thread:$0]  %s263_s0, 128, %s18_s16, [#allocation3]  }
   0xc   :  { %s201_s22 = scalar_lea.vmem %s27_s18, 512  ;;  %p206_p6 = scmp.lt.s32.totalorder %s27_s18, %s27_s18 }
   0xd   :  { %p202_p5 = scmp.ne.s32.totalorder %s27_s18, %s201_s22  ;;  %p207_p7 = scmp.lt.s32.totalorder %s201_s22, %s201_s22 }
   0xf   :  { %p208_p8 = por %p207_p7, %p206_p6 }
  0x11   :  { %p209_p9 = pnand %p208_p8, %p202_p5 }
  0x13   :  { %212 = shalt.err (!%p209_p9)
}
  0x14   :  { %s219_s23 = smov 128   ;;  %s220_s24 = smov 8  }
  0x15   :  { %32 = dma.hbm_to_vmem [thread:$0]  %s264_s1, 512, %s27_s18, [#allocation5], %s219_s23, %s219_s23, %s220_s24  }
  0x16   :  { %213 = dma.done.wait [#allocation3], 128  }
  0x17   :  { %214 = vsyncadd [#allocation3], 4294967168 }
  0x18   :  { %215 = dma.done.wait [#allocation5], 512  }
  0x19   :  { %216 = vsyncadd [#allocation5], 4294966784  ;;  %v221_v0 = vmov 0.0   ;;  %vm222_vm0 = vmmov 0   ;;  %v47_v1 = vld [vmem:[#allocation4 + $0x18] sm:$0xff]  ;;  %v46_v2 = vld [vmem:[#allocation4 + $0x10] sm:$0xff] }
  0x1a   :  { %156 = vmatprep.subr.mxu0 %v221_v0  ;;  %164 = vmatprep.mubr.msk.f32.mxu0 %vm222_vm0, %v221_v0  ;;  %v45_v3 = vld [vmem:[#allocation4 + $0x8] sm:$0xff]  ;;  %v44_v4 = vld [vmem:[#allocation4] sm:$0xff]  ;;  %v43_v5 = vld [vmem:[#allocation2] sm:$0xff]  ;;  %vm55_vm1 = vcmask 261120   ;;  %vm140_vm2 = vcmask 7168  }
  0x1b   :  { %157 = vmatpush3.msra.mxu0 %v47_v1  ;;  %v148_v6 = vld [vmem:[%s265_s2] ss:$0 sm:$0xff] }
  0x1c   :  { %158 = vmatprep.subr.mxu0 %v221_v0  ;;  %v150_v10 = vld [vmem:[%s266_s3] ss:$0 sm:$0xff] }
  0x1d   :  { %159 = vmatpush3.msra.mxu0 %v46_v2 }
  0x1e   :  { %160 = vmatprep.subr.mxu0 %v221_v0 }
  0x1f   :  { %161 = vmatpush3.msra.mxu0 %v45_v3 }
  0x20   :  { %162 = vmatprep.subr.mxu0 %v221_v0 }
  0x21   :  { %163 = vmatpush3.msra.mxu0 %v44_v4 }
  0x22   :  { %165 = vmatmul.mubr.msk.f32.vlgmr.msra.gmra.mxu0 %vm55_vm1, %v43_v5 }
  0xe2   :  { %v125_v7 = vpop.f32.mrf.mxu0 }
  0xe3   :  { %v126_v8 = vadd.f32 %v148_v6, %v125_v7 }
  0xe4   :  { %v166_v9 = vpop.f32.mrf.mxu0 }
  0xe5   :  { %v129_v11 = vmax.f32 %v126_v8, 0.0 }
  0xe7   :  { %v137_v12 = vmul.f32 %v150_v10, %v129_v11 }
  0xe9   :  { %138 = vadd.xlane.f32.xlu0 %v137_v12 }
 0x172   :  { %v139_v13 = vpop.xlane.xlu0 %138 }
 0x173   :  { %141 = vst.msk [vmem:[%s267_s4] sm:$0xff] %vm140_vm2, %v139_v13 }
 0x174   :  { %146 = vsyncpa [#allocation3], 1 }
 0x175   :  { %147 = vsyncpa [#allocation5], 1 }

</bundles_post_ra>
